<compile_context>
chip_gen: v5e
topology: v5e:2x2
jax: 0.10.0
libtpu: 0.0.40
codegen_flags: <defaults>
</compile_context>

<pallas_src>
import functools

import jax
import jax.numpy as jnp
from jax.experimental import pallas as pl
from jax.experimental.pallas import tpu as pltpu

HIDDEN = 256
LANE = 128


def _round_up(v, m):
    return (v + m - 1) // m * m


def mlp_kernel(x_ref, w1_ref, b1_ref, w2_ref, b2_ref, w3_ref, b3_ref, o_ref):
    # bf16 operands feed the MXU natively; accumulation stays in f32.
    x = x_ref[...]
    h1 = jnp.dot(x, w1_ref[...], preferred_element_type=jnp.float32) + b1_ref[...]
    h1 = jnp.maximum(h1, 0.0).astype(jnp.bfloat16)
    h2 = jnp.dot(h1, w2_ref[...], preferred_element_type=jnp.float32) + b2_ref[...]
    h2 = jnp.maximum(h2, 0.0).astype(jnp.bfloat16)
    out = jnp.dot(h2, w3_ref[...], preferred_element_type=jnp.float32) + b3_ref[...]
    o_ref[...] = out.astype(o_ref.dtype)


def prepare_params(params):
    """One-time prep: cast weights to bf16, keep biases f32, lane-pad fc3."""
    w1 = params["w1"].astype(jnp.bfloat16)
    w2 = params["w2"].astype(jnp.bfloat16)
    b1 = params["b1"].astype(jnp.float32).reshape(1, -1)
    b2 = params["b2"].astype(jnp.float32).reshape(1, -1)
    w3 = params["w3"].astype(jnp.float32)
    b3 = params["b3"].astype(jnp.float32).reshape(1, -1)

    out_dim = w3.shape[1]
    out_pad = _round_up(out_dim, LANE)
    if out_pad != out_dim:
        # Zero-padded columns cost nothing extra on the MXU but make the
        # output store a full, unmasked 128-lane write.
        w3 = jnp.pad(w3, ((0, 0), (0, out_pad - out_dim)))
        b3 = jnp.pad(b3, ((0, 0), (0, out_pad - out_dim)))
    w3 = w3.astype(jnp.bfloat16)

    return {"w1": w1, "b1": b1, "w2": w2, "b2": b2, "w3": w3, "b3": b3}


@functools.partial(jax.jit, static_argnames=("out_dim", "block_b"))
def neural_network_forward(x, prepared, *, out_dim, block_b=512):
    """x: (B, input_dim) float32; prepared: output of prepare_params."""
    w1, b1 = prepared["w1"], prepared["b1"]
    w2, b2 = prepared["w2"], prepared["b2"]
    w3, b3 = prepared["w3"], prepared["b3"]

    B, in_dim = x.shape
    hid = w1.shape[1]
    out_pad = w3.shape[1]

    # Batch tile: as large as requested (bigger tiles = better MXU row
    # utilization + fewer grid steps), but aim for >=2 grid steps so the v7x
    # megacore can shard the batch axis; keep tiles sublane(8)-aligned.
    bb = min(block_b, _round_up(B, 8))
    if B >= 16 and pl.cdiv(B, bb) < 2:
        bb = max(8, _round_up(pl.cdiv(B, 2), 8))
    bb = max(8, _round_up(bb, 8))

    # Pad the batch so the grid divides evenly; padded rows are sliced off.
    B_pad = _round_up(B, bb)
    x = x.astype(jnp.bfloat16)
    if B_pad != B:
        x = jnp.pad(x, ((0, B_pad - B), (0, 0)))

    grid = (B_pad // bb,)

    # Only x and the output stream per grid step; weights/biases are
    # constant-index blocks that stay resident in VMEM.
    in_specs = [
        pl.BlockSpec((bb, in_dim), lambda i: (i, 0)),     # x tile
        pl.BlockSpec((in_dim, hid), lambda i: (0, 0)),    # w1
        pl.BlockSpec((1, hid), lambda i: (0, 0)),         # b1
        pl.BlockSpec((hid, hid), lambda i: (0, 0)),       # w2
        pl.BlockSpec((1, hid), lambda i: (0, 0)),         # b2
        pl.BlockSpec((hid, out_pad), lambda i: (0, 0)),   # w3 (lane-padded)
        pl.BlockSpec((1, out_pad), lambda i: (0, 0)),     # b3 (lane-padded)
    ]
    out_spec = pl.BlockSpec((bb, out_pad), lambda i: (i, 0))

    out_padded = pl.pallas_call(
        mlp_kernel,
        out_shape=jax.ShapeDtypeStruct((B_pad, out_pad), jnp.float32),
        grid_spec=pltpu.PrefetchScalarGridSpec(
            num_scalar_prefetch=0,
            grid=grid,
            in_specs=in_specs,
            out_specs=out_spec,
        ),
        compiler_params=pltpu.CompilerParams(
            dimension_semantics=("parallel",),
        ),
    )(x, w1, b1, w2, b2, w3, b3)

    # Drop batch padding and the lane padding of the last layer.
    return out_padded[:B, :out_dim]


def init_params(key, input_dim, output_dim, hidden=HIDDEN):
    """Mimics nn.Linear's U(-1/sqrt(fan_in), 1/sqrt(fan_in)) init (f32 master)."""
    ks = jax.random.split(key, 6)

    def linear(kw, kb, fan_in, fan_out):
        bound = 1.0 / jnp.sqrt(fan_in)
        w = jax.random.uniform(kw, (fan_in, fan_out), jnp.float32, -bound, bound)
        b = jax.random.uniform(kb, (1, fan_out), jnp.float32, -bound, bound)
        return w, b

    w1, b1 = linear(ks[0], ks[1], input_dim, hidden)
    w2, b2 = linear(ks[2], ks[3], hidden, hidden)
    w3, b3 = linear(ks[4], ks[5], hidden, output_dim)
    return {"w1": w1, "b1": b1, "w2": w2, "b2": b2, "w3": w3, "b3": b3}


def reference_forward(x, prepared, out_dim):
    """Pure-JAX reference mirroring the kernel's bf16-in / f32-accumulate path."""
    f32 = jnp.float32
    xb = x.astype(jnp.bfloat16).astype(f32)
    h1 = jnp.maximum(xb @ prepared["w1"].astype(f32) + prepared["b1"], 0.0)
    h1 = h1.astype(jnp.bfloat16).astype(f32)
    h2 = jnp.maximum(h1 @ prepared["w2"].astype(f32) + prepared["b2"], 0.0)
    h2 = h2.astype(jnp.bfloat16).astype(f32)
    out = h2 @ prepared["w3"].astype(f32) + prepared["b3"]
    return out[:, :out_dim]


if __name__ == "__main__":
    key = jax.random.PRNGKey(0)
    k_x, k_p = jax.random.split(key)

    batch, input_dim, output_dim = 128, 32, 16
    x = jax.random.normal(k_x, (batch, input_dim), jnp.float32)
    params = init_params(k_p, input_dim, output_dim)
    prepared = prepare_params(params)

    out = neural_network_forward(x, prepared, out_dim=output_dim, block_b=512)
    out = jax.block_until_ready(out)

    ref = reference_forward(x, prepared, output_dim)
    assert out.shape == (batch, output_dim), out.shape
    max_err = float(jnp.max(jnp.abs(out - ref)))
    assert jnp.allclose(out, ref, atol=2e-2, rtol=2e-2), f"mismatch vs reference (max abs err {max_err})"

    print("KERNEL_OK")
</pallas_src>

<mosaic_0001>
module attributes {stable_mosaic.version = 11 : i64} {
  func.func @mlp_kernel(%arg0: i32, %arg1: memref<64x32xbf16, #tpu.memory_space<vmem>>, %arg2: memref<32x256xbf16, #tpu.memory_space<vmem>>, %arg3: memref<1x256xf32, #tpu.memory_space<vmem>>, %arg4: memref<256x256xbf16, #tpu.memory_space<vmem>>, %arg5: memref<1x256xf32, #tpu.memory_space<vmem>>, %arg6: memref<256x128xbf16, #tpu.memory_space<vmem>>, %arg7: memref<1x128xf32, #tpu.memory_space<vmem>>, %arg8: memref<64x128xf32, #tpu.memory_space<vmem>>) attributes {dimension_semantics = [#tpu.dimension_semantics<parallel>], iteration_bounds = array<i64: 2>, scalar_prefetch = 0 : i64, scratch_operands = 0 : i64, tpu.core_type = #tpu.core_type<tc>, window_params = [{transform_indices = @transform_0, window_bounds = array<i64: 64, 32>}, {pipeline_mode = #tpu.pipeline_mode<synchronous>, transform_indices = @transform_1, window_bounds = array<i64: 32, 256>}, {pipeline_mode = #tpu.pipeline_mode<synchronous>, transform_indices = @transform_2, window_bounds = array<i64: 1, 256>}, {pipeline_mode = #tpu.pipeline_mode<synchronous>, transform_indices = @transform_3, window_bounds = array<i64: 256, 256>}, {pipeline_mode = #tpu.pipeline_mode<synchronous>, transform_indices = @transform_4, window_bounds = array<i64: 1, 256>}, {pipeline_mode = #tpu.pipeline_mode<synchronous>, transform_indices = @transform_5, window_bounds = array<i64: 256, 128>}, {pipeline_mode = #tpu.pipeline_mode<synchronous>, transform_indices = @transform_6, window_bounds = array<i64: 1, 128>}, {transform_indices = @transform_7, window_bounds = array<i64: 64, 128>}]} {
    %c0 = arith.constant 0 : index
    %c0_0 = arith.constant 0 : index
    %0 = vector.load %arg1[%c0, %c0_0] : memref<64x32xbf16, #tpu.memory_space<vmem>>, vector<64x32xbf16>
    %c0_1 = arith.constant 0 : index
    %c0_2 = arith.constant 0 : index
    %1 = vector.load %arg2[%c0_1, %c0_2] : memref<32x256xbf16, #tpu.memory_space<vmem>>, vector<32x256xbf16>
    %cst = arith.constant dense<0.000000e+00> : vector<64x256xf32>
    %2 = tpu.matmul %0, %1, %cst {dimension_numbers = #tpu.dot_dimension_numbers<[1], [0], [0], [1], [0, 0, 1, 1], [], []>} : vector<64x32xbf16>, vector<32x256xbf16>, vector<64x256xf32> -> vector<64x256xf32>
    %c0_3 = arith.constant 0 : index
    %c0_4 = arith.constant 0 : index
    %3 = vector.load %arg3[%c0_3, %c0_4] : memref<1x256xf32, #tpu.memory_space<vmem>>, vector<1x256xf32>
    %4 = vector.broadcast %3 : vector<1x256xf32> to vector<64x256xf32>
    %5 = arith.addf %2, %4 : vector<64x256xf32>
    %cst_5 = arith.constant 0.000000e+00 : f32
    %6 = vector.broadcast %cst_5 : f32 to vector<64x256xf32>
    %7 = arith.maximumf %5, %6 : vector<64x256xf32>
    %8 = arith.truncf %7 : vector<64x256xf32> to vector<64x256xbf16>
    %c0_6 = arith.constant 0 : index
    %c0_7 = arith.constant 0 : index
    %9 = vector.load %arg4[%c0_6, %c0_7] : memref<256x256xbf16, #tpu.memory_space<vmem>>, vector<256x256xbf16>
    %cst_8 = arith.constant dense<0.000000e+00> : vector<64x256xf32>
    %10 = tpu.matmul %8, %9, %cst_8 {dimension_numbers = #tpu.dot_dimension_numbers<[1], [0], [0], [1], [0, 0, 1, 1], [], []>} : vector<64x256xbf16>, vector<256x256xbf16>, vector<64x256xf32> -> vector<64x256xf32>
    %c0_9 = arith.constant 0 : index
    %c0_10 = arith.constant 0 : index
    %11 = vector.load %arg5[%c0_9, %c0_10] : memref<1x256xf32, #tpu.memory_space<vmem>>, vector<1x256xf32>
    %12 = vector.broadcast %11 : vector<1x256xf32> to vector<64x256xf32>
    %13 = arith.addf %10, %12 : vector<64x256xf32>
    %cst_11 = arith.constant 0.000000e+00 : f32
    %14 = vector.broadcast %cst_11 : f32 to vector<64x256xf32>
    %15 = arith.maximumf %13, %14 : vector<64x256xf32>
    %16 = arith.truncf %15 : vector<64x256xf32> to vector<64x256xbf16>
    %c0_12 = arith.constant 0 : index
    %c0_13 = arith.constant 0 : index
    %17 = vector.load %arg6[%c0_12, %c0_13] : memref<256x128xbf16, #tpu.memory_space<vmem>>, vector<256x128xbf16>
    %cst_14 = arith.constant dense<0.000000e+00> : vector<64x128xf32>
    %18 = tpu.matmul %16, %17, %cst_14 {dimension_numbers = #tpu.dot_dimension_numbers<[1], [0], [0], [1], [0, 0, 1, 1], [], []>} : vector<64x256xbf16>, vector<256x128xbf16>, vector<64x128xf32> -> vector<64x128xf32>
    %c0_15 = arith.constant 0 : index
    %c0_16 = arith.constant 0 : index
    %19 = vector.load %arg7[%c0_15, %c0_16] : memref<1x128xf32, #tpu.memory_space<vmem>>, vector<1x128xf32>
    %20 = vector.broadcast %19 : vector<1x128xf32> to vector<64x128xf32>
    %21 = arith.addf %18, %20 : vector<64x128xf32>
    %c0_17 = arith.constant 0 : index
    %c0_18 = arith.constant 0 : index
    %22 = vector.load %arg8[%c0_17, %c0_18] : memref<64x128xf32, #tpu.memory_space<vmem>>, vector<64x128xf32>
    tpu.vector_store %arg8[%c0_17, %c0_18], %21 {strides = array<i32>} : memref<64x128xf32, #tpu.memory_space<vmem>>, vector<64x128xf32>,
    return
  }
  func.func @transform_0(%arg0: i32) -> (i32, i32) {
    %c0_i32 = arith.constant 0 : i32
    %c0_i32_0 = arith.constant 0 : i32
    return %arg0, %c0_i32 : i32, i32
  }
  func.func @transform_1(%arg0: i32) -> (i32, i32) {
    %c0_i32 = arith.constant 0 : i32
    %c0_i32_0 = arith.constant 0 : i32
    %c0_i32_1 = arith.constant 0 : i32
    return %c0_i32, %c0_i32_0 : i32, i32
  }
  func.func @transform_2(%arg0: i32) -> (i32, i32) {
    %c0_i32 = arith.constant 0 : i32
    %c0_i32_0 = arith.constant 0 : i32
    %c0_i32_1 = arith.constant 0 : i32
    return %c0_i32, %c0_i32_0 : i32, i32
  }
  func.func @transform_3(%arg0: i32) -> (i32, i32) {
    %c0_i32 = arith.constant 0 : i32
    %c0_i32_0 = arith.constant 0 : i32
    %c0_i32_1 = arith.constant 0 : i32
    return %c0_i32, %c0_i32_0 : i32, i32
  }
  func.func @transform_4(%arg0: i32) -> (i32, i32) {
    %c0_i32 = arith.constant 0 : i32
    %c0_i32_0 = arith.constant 0 : i32
    %c0_i32_1 = arith.constant 0 : i32
    return %c0_i32, %c0_i32_0 : i32, i32
  }
  func.func @transform_5(%arg0: i32) -> (i32, i32) {
    %c0_i32 = arith.constant 0 : i32
    %c0_i32_0 = arith.constant 0 : i32
    %c0_i32_1 = arith.constant 0 : i32
    return %c0_i32, %c0_i32_0 : i32, i32
  }
  func.func @transform_6(%arg0: i32) -> (i32, i32) {
    %c0_i32 = arith.constant 0 : i32
    %c0_i32_0 = arith.constant 0 : i32
    %c0_i32_1 = arith.constant 0 : i32
    return %c0_i32, %c0_i32_0 : i32, i32
  }
  func.func @transform_7(%arg0: i32) -> (i32, i32) {
    %c0_i32 = arith.constant 0 : i32
    %c0_i32_0 = arith.constant 0 : i32
    return %arg0, %c0_i32 : i32, i32
  }
}

</mosaic_0001>

<bundles_post_ra>
// kernel: neural_network_forward.1
= control target key start
LH: loop header
LB: loop body
LE: loop exit
PB: predicated region body
PF: predicated region fallthrough
CT: control target
= control target key end

     0   :  { %12 = vsyncpa [#allocation3], 0  ;;  %s1709_s0 = inlined_call_operand.vmem [shape: bf16[128,32], index: 0, kind: input, shape index: {}]   ;;  %s1710_s1 = inlined_call_operand.hbm [shape: bf16[32,256], index: 1, kind: input, shape index: {}]   ;;  %s1711_s2 = inlined_call_operand.vmem [shape: f32[1,256], index: 2, kind: input, shape index: {}]   ;;  %s1712_s3 = inlined_call_operand.hbm [shape: bf16[256,256], index: 3, kind: input, shape index: {}]   ;;  %s1713_s4 = inlined_call_operand.vmem [shape: f32[1,256], index: 4, kind: input, shape index: {}]   ;;  %s1714_s5 = inlined_call_operand.vmem [shape: bf16[256,128], index: 5, kind: input, shape index: {}]   ;;  %s1715_s6 = inlined_call_operand.vmem [shape: f32[1,128], index: 6, kind: input, shape index: {}]   ;;  %s1716_s7 = inlined_call_operand.vmem [shape: f32[128,128], index: 7, kind: output, shape index: {}]  }
   0x1   :  { %13 = vsyncpa [#allocation5], 0  ;;  %s1539_s24 = smov 0  }
   0x2 LB: > { %s213_s27 = sshll.u32 %s1710_s1, 4  ;;  %s1084_s28 = sadd.s32 4294967295, %s1493_s24   ;;  %s1493_s24 = sphi %s1539_s24, %s19_s24   ;;  %s214_s27 = int_to_ptr.hbm [resolvable:$true] %s213_s27 }
   0x3   : > { %p1086_p0 = scmp.ge.s32.totalorder %s1493_s24, 1  ;;  %p202_p1 = scmp.lt.s32.totalorder %s1493_s24, 3 }
   0x4   : > { %p1550_p2 = scmp.eq.s32.totalorder %s1084_s28, 0  ;;  %s1495_s8 = smov [#allocation2]  }
   0x5   : > { %p1554_p3 = pnand %p1086_p0, %p202_p1  ;;  %s215_s9 = sshll.u32 %s1495_s8, 4  ;;  %s216_s9 = int_to_ptr.vmem [resolvable:$true] %s215_s9 }
   0x6   : > { %s230_s12 = sshll.u32 %s1712_s3, 4  ;;  %s1496_s13 = smov [#allocation4]   ;;  %s231_s12 = int_to_ptr.hbm [resolvable:$true] %s230_s12 }
   0x7   : > { %p1395_p4 = pneg %p1554_p3  ;;  %s232_s14 = sshll.u32 %s1496_s13, 4  ;;  %s233_s14 = int_to_ptr.vmem [resolvable:$true] %s232_s14 }
   0x8   : > { %s1497_s15 = smov 128   ;;  %s1498_s16 = smov 8  }
   0x9   : > { %p1396_p5 = pnand %p1550_p2, %p1395_p4  ;;  %266 = sbr.rel (%p1554_p3) target bundleno = 509 (0x1fd), region = 48 }
   0xb   : > { %1398 = dma.hbm_to_vmem [thread:$0]  (!%p1396_p5), %s214_s27, 512, %s216_s9, [#allocation3], %s1497_s15, %s1497_s15, %s1498_s16  }
   0xc   : > { %1401 = dma.hbm_to_vmem [thread:$0]  (!%p1396_p5), %s231_s12, 4096, %s233_s14, [#allocation5], %s1497_s15, %s1497_s15, %s1498_s16  }
   0xe   : > { %1484 = dma.done.wait (%p1550_p2), [#allocation3], 512  }
   0xf   : > { %1486 = vsyncadd (%p1550_p2), [#allocation3], 4294966784 }
  0x10   : > { %1488 = dma.done.wait (%p1550_p2), [#allocation5], 4096  }
  0x11   : > { %1490 = vsyncadd (%p1550_p2), [#allocation5], 4294963200  ;;  %s1093_s17 = sshll.u32 %s1084_s28, 3  ;;  %v1123_v0 = vld [vmem:[#allocation2 + $0x10] sm:$0xf]  ;;  %vm375_vm0 = vcmask 261120  }
  0x12   : > { %p305_p6 = scmp.lt.s32.totalorder %s1093_s17, 15  ;;  %v1338_v1 = vld [vmem:[#allocation2 + $0x14] sm:$0xf0]  ;;  %v1337_v2 = vld [vmem:[#allocation2 + $0x14] sm:$0xf] }
  0x13   : > { %v1124_v3 = vor.u32 %v1338_v1, %v1123_v0  ;;  %v1125_v4 = vld [vmem:[#allocation2 + $0x18] sm:$0xf0]  ;;  %v1115_v5 = vld [vmem:[#allocation2] sm:$0xf]  ;;  %v1336_v6 = vld [vmem:[#allocation2 + $0x4] sm:$0xf0] }
  0x14   : > { %s1720_s17 = smov (!%p305_p6, %s1093_s17), 15  ;;  %v1128_v7 = vor.u32 %v1337_v2, %v1125_v4  ;;  %v1335_v8 = vld [vmem:[#allocation2 + $0x4] sm:$0xf]  ;;  %v1117_v9 = vld [vmem:[#allocation2 + $0x8] sm:$0xf0]  ;;  %v1116_v10 = vor.u32 %v1336_v6, %v1115_v5 }
  0x15   : > { %s1094_s18 = sshll.u32 %s1720_s17, 2  ;;  %394 = vmatpush.bf16.msra.mxu0 %v1124_v3  ;;  %v1120_v11 = vor.u32 %v1335_v8, %v1117_v9  ;;  %v1353_v14 = vld [vmem:[#allocation4 + $0x74] sm:$0xf]  ;;  %v1197_v15 = vld [vmem:[#allocation4 + $0x78] sm:$0xf0] }
  0x16   : > { %s1581_s21 = scalar_lea.vmem %s1709_s0, %s1094_s18  ;;  %423 = vmatpush.bf16.msra.mxu1 %v1128_v7  ;;  %v1369_v16 = vld [vmem:[#allocation4 + $0xf4] sm:$0xf]  ;;  %v1200_v17 = vor.u32 %v1353_v14, %v1197_v15  ;;  %v1261_v18 = vld [vmem:[#allocation4 + $0xf8] sm:$0xf0]  ;;  %v1351_v19 = vld [vmem:[#allocation4 + $0x64] sm:$0xf] }
  0x17   : > { %v1331_v12 = vld [vmem:[%s1581_s21] sm:$0xff]  ;;  %v1332_v13 = vld [vmem:[%s1581_s21 + $0x8] sm:$0xff]  ;;  %v1264_v21 = vor.u32 %v1369_v16, %v1261_v18  ;;  %v1349_v25 = vld [vmem:[#allocation4 + $0x54] sm:$0xf]  ;;  %s1096_s18 = sshll.u32 %s1720_s17, 3 }
  0x18   : > { %v1189_v20 = vld [vmem:[#allocation4 + $0x68] sm:$0xf0]  ;;  %v1367_v22 = vld [vmem:[#allocation4 + $0xe4] sm:$0xf]  ;;  %v1181_v26 = vld [vmem:[#allocation4 + $0x58] sm:$0xf0] }
  0x19   : > { %395 = vmatpush.bf16.msra.mxu0 %v1116_v10  ;;  %v1253_v23 = vld [vmem:[#allocation4 + $0xe8] sm:$0xf0]  ;;  %v1192_v24 = vor.u32 %v1351_v19, %v1189_v20  ;;  %v1365_v28 = vld [vmem:[#allocation4 + $0xd4] sm:$0xf]  ;;  %v1245_v29 = vld [vmem:[#allocation4 + $0xd8] sm:$0xf0]  ;;  %v1184_v37 = vor.u32 %v1349_v25, %v1181_v26 }
  0x1a   : > { %424 = vmatpush.bf16.msra.mxu1 %v1120_v11  ;;  %v1256_v27 = vor.u32 %v1367_v22, %v1253_v23  ;;  %v1195_v30 = vld [vmem:[#allocation4 + $0x70] sm:$0xf]  ;;  %v1354_v31 = vld [vmem:[#allocation4 + $0x74] sm:$0xf0]  ;;  %v1187_v36 = vld [vmem:[#allocation4 + $0x60] sm:$0xf]  ;;  %v1248_v41 = vor.u32 %v1365_v28, %v1245_v29 }
  0x1b   : > { %v1259_v32 = vld [vmem:[#allocation4 + $0xf0] sm:$0xf]  ;;  %v1370_v33 = vld [vmem:[#allocation4 + $0xf4] sm:$0xf0]  ;;  %v1196_v34 = vor.u32 %v1354_v31, %v1195_v30  ;;  %v1352_v38 = vld [vmem:[#allocation4 + $0x64] sm:$0xf0] }
  0x1c   : > { %1129 = vmatmul.msk.bf16.vlgmr.msra.gmra.mxu0 %vm375_vm0, %v1331_v12  ;;  %v1260_v35 = vor.u32 %v1370_v33, %v1259_v32  ;;  %v1251_v39 = vld [vmem:[#allocation4 + $0xe0] sm:$0xf]  ;;  %v1368_v40 = vld [vmem:[#allocation4 + $0xe4] sm:$0xf0]  ;;  %v1188_v42 = vor.u32 %v1352_v38, %v1187_v36  ;;  %v1347_v43 = vld [vmem:[#allocation4 + $0x44] sm:$0xf] }
  0x1d   : > { %1133 = vmatmul.msk.bf16.vlgmr.msra.gmra.mxu1 %vm375_vm0, %v1331_v12  ;;  %726 = vmatpush.bf16.msrb.mxu0 %v1200_v17  ;;  %v1173_v44 = vld [vmem:[#allocation4 + $0x48] sm:$0xf0]  ;;  %v1363_v45 = vld [vmem:[#allocation4 + $0xc4] sm:$0xf]  ;;  %v1252_v46 = vor.u32 %v1368_v40, %v1251_v39  ;;  %v1179_v48 = vld [vmem:[#allocation4 + $0x50] sm:$0xf] }
  0x1e   : > { %755 = vmatpush.bf16.msrb.mxu1 %v1264_v21  ;;  %668 = vmatpush.bf16.msra.mxu2 %v1196_v34  ;;  %v1237_v47 = vld [vmem:[#allocation4 + $0xc8] sm:$0xf0]  ;;  %v1350_v49 = vld [vmem:[#allocation4 + $0x54] sm:$0xf0]  ;;  %v1333_v50 = vld [vmem:[%s1581_s21 + $0x10] sm:$0xff]  ;;  %v1176_v53 = vor.u32 %v1347_v43, %v1173_v44 }
  0x1f   : > { %697 = vmatpush.bf16.msra.mxu3 %v1260_v35  ;;  %v1243_v51 = vld [vmem:[#allocation4 + $0xd0] sm:$0xf]  ;;  %v1366_v52 = vld [vmem:[#allocation4 + $0xd4] sm:$0xf0]  ;;  %v1240_v54 = vor.u32 %v1363_v45, %v1237_v47  ;;  %v1345_v55 = vld [vmem:[#allocation4 + $0x34] sm:$0xf]  ;;  %v1180_v57 = vor.u32 %v1350_v49, %v1179_v48 }
  0x20   : > { %v1165_v56 = vld [vmem:[#allocation4 + $0x38] sm:$0xf0]  ;;  %v1361_v58 = vld [vmem:[#allocation4 + $0xb4] sm:$0xf]  ;;  %v1244_v59 = vor.u32 %v1366_v52, %v1243_v51  ;;  %v1171_v61 = vld [vmem:[#allocation4 + $0x40] sm:$0xf] }
  0x21   : > { %727 = vmatpush.bf16.msrb.mxu0 %v1192_v24  ;;  %v1229_v60 = vld [vmem:[#allocation4 + $0xb8] sm:$0xf0]  ;;  %v1348_v62 = vld [vmem:[#allocation4 + $0x44] sm:$0xf0]  ;;  %v1235_v63 = vld [vmem:[#allocation4 + $0xc0] sm:$0xf]  ;;  %v1168_v1 = vor.u32 %v1345_v55, %v1165_v56 }
  0x22   : > { %756 = vmatpush.bf16.msrb.mxu1 %v1256_v27  ;;  %669 = vmatpush.bf16.msra.mxu2 %v1188_v42  ;;  %v1364_v0 = vld [vmem:[#allocation4 + $0xc4] sm:$0xf0]  ;;  %v1232_v2 = vor.u32 %v1361_v58, %v1229_v60  ;;  %v1172_v3 = vor.u32 %v1348_v62, %v1171_v61  ;;  %v1343_v4 = vld [vmem:[#allocation4 + $0x24] sm:$0xf]  ;;  %v1157_v5 = vld [vmem:[#allocation4 + $0x28] sm:$0xf0] }
  0x23   : > { %698 = vmatpush.bf16.msra.mxu3 %v1252_v46  ;;  %v1236_v6 = vor.u32 %v1364_v0, %v1235_v63  ;;  %v1160_v7 = vor.u32 %v1343_v4, %v1157_v5  ;;  %v1334_v8 = vld [vmem:[%s1581_s21 + $0x18] sm:$0xff]  ;;  %v1163_v9 = vld [vmem:[#allocation4 + $0x30] sm:$0xf]  ;;  %v1359_v15 = vld [vmem:[#allocation4 + $0xa4] sm:$0xf]  ;;  %s1696_s21 = scalar_lea.vmem %s1716_s7, %s1096_s18 }
  0x24   : > { %v1346_v10 = vld [vmem:[#allocation4 + $0x34] sm:$0xf0]  ;;  %v1227_v11 = vld [vmem:[#allocation4 + $0xb0] sm:$0xf]  ;;  %v1221_v16 = vld [vmem:[#allocation4 + $0xa8] sm:$0xf0] }
  0x25   : > { %728 = vmatpush.bf16.msrb.mxu0 %v1184_v37  ;;  %v1164_v12 = vor.u32 %v1346_v10, %v1163_v9  ;;  %v1224_v17 = vor.u32 %v1359_v15, %v1221_v16  ;;  %v1155_v18 = vld [vmem:[#allocation4 + $0x20] sm:$0xf]  ;;  %v1344_v19 = vld [vmem:[#allocation4 + $0x24] sm:$0xf0]  ;;  %v1341_v23 = vld [vmem:[#allocation4 + $0x14] sm:$0xf] }
  0x26   : > { %757 = vmatpush.bf16.msrb.mxu1 %v1248_v41  ;;  %670 = vmatpush.bf16.msra.mxu2 %v1180_v57  ;;  %v1219_v20 = vld [vmem:[#allocation4 + $0xa0] sm:$0xf]  ;;  %v1156_v21 = vor.u32 %v1344_v19, %v1155_v18  ;;  %v1360_v22 = vld [vmem:[#allocation4 + $0xa4] sm:$0xf0]  ;;  %v1149_v24 = vld [vmem:[#allocation4 + $0x18] sm:$0xf0] }
  0x27   : > { %699 = vmatpush.bf16.msra.mxu3 %v1244_v59  ;;  %v1220_v25 = vor.u32 %v1360_v22, %v1219_v20  ;;  %v1152_v26 = vor.u32 %v1341_v23, %v1149_v24  ;;  %v1147_v27 = vld [vmem:[#allocation4 + $0x10] sm:$0xf]  ;;  %v1342_v28 = vld [vmem:[#allocation4 + $0x14] sm:$0xf0]  ;;  %v1357_v32 = vld [vmem:[#allocation4 + $0x94] sm:$0xf] }
  0x28   : > { %v1211_v29 = vld [vmem:[#allocation4 + $0x90] sm:$0xf]  ;;  %v1148_v30 = vor.u32 %v1342_v28, %v1147_v27  ;;  %v1358_v31 = vld [vmem:[#allocation4 + $0x94] sm:$0xf0]  ;;  %v1213_v33 = vld [vmem:[#allocation4 + $0x98] sm:$0xf0] }
  0x29   : > { %729 = vmatpush.bf16.msrb.mxu0 %v1176_v53  ;;  %v1212_v34 = vor.u32 %v1358_v31, %v1211_v29  ;;  %v1216_v35 = vor.u32 %v1357_v32, %v1213_v33  ;;  %v1139_v36 = vld [vmem:[#allocation4] sm:$0xf]  ;;  %v1340_v37 = vld [vmem:[#allocation4 + $0x4] sm:$0xf0]  ;;  %v1339_v41 = vld [vmem:[#allocation4 + $0x4] sm:$0xf] }
  0x2a   : > { %758 = vmatpush.bf16.msrb.mxu1 %v1240_v54  ;;  %671 = vmatpush.bf16.msra.mxu2 %v1172_v3  ;;  %v1203_v38 = vld [vmem:[#allocation4 + $0x80] sm:$0xf]  ;;  %v1140_v39 = vor.u32 %v1340_v37, %v1139_v36  ;;  %v1356_v40 = vld [vmem:[#allocation4 + $0x84] sm:$0xf0]  ;;  %v1141_v42 = vld [vmem:[#allocation4 + $0x8] sm:$0xf0] }
  0x2b   : > { %700 = vmatpush.bf16.msra.mxu3 %v1236_v6  ;;  %v1204_v43 = vor.u32 %v1356_v40, %v1203_v38  ;;  %v1144_v44 = vor.u32 %v1339_v41, %v1141_v42  ;;  %v1355_v45 = vld [vmem:[#allocation4 + $0x84] sm:$0xf]  ;;  %v1205_v46 = vld [vmem:[#allocation4 + $0x88] sm:$0xf0]  ;;  %v329_v48 = vld [vmem:[%s1711_s2] sm:$0x3] }
  0x2c   : > { %1130 = vmatmul.msk.bf16.gmra.mxu0 %vm375_vm0, %v1332_v13  ;;  %v1208_v47 = vor.u32 %v1355_v45, %v1205_v46  ;;  %v1598_v51 = vperm.slane %v329_v48, 0  ;;  %v1600_v52 = vperm.slane %v329_v48, 1  ;;  %v1378_v16 = vld [vmem:[%s1714_s5 + $0x38] sm:$0xff]  ;;  %v1377_v19 = vld [vmem:[%s1714_s5 + $0x30] sm:$0xff]  ;;  %v1384_v22 = vld [vmem:[%s1714_s5 + $0x68] sm:$0xff] }
  0x2d   : > { %1134 = vmatmul.msk.bf16.gmra.mxu1 %vm375_vm0, %v1332_v13  ;;  %730 = vmatpush.bf16.msrb.mxu0 %v1168_v1  ;;  %v1362_v13 = vld [vmem:[#allocation4 + $0xb4] sm:$0xf0]  ;;  %v1385_v20 = vld [vmem:[%s1714_s5 + $0x70] sm:$0xff]  ;;  %v1375_v29 = vld [vmem:[%s1714_s5 + $0x20] sm:$0xff] }
  0x2e   : > { %759 = vmatpush.bf16.msrb.mxu1 %v1232_v2  ;;  %v1228_v14 = vor.u32 %v1362_v13, %v1227_v11  ;;  %672 = vmatpush.bf16.msra.mxu2 %v1164_v12  ;;  %v1374_v37 = vld [vmem:[%s1714_s5 + $0x18] sm:$0xff]  ;;  %v1373_v41 = vld [vmem:[%s1714_s5 + $0x10] sm:$0xff] }
  0x2f   : > { %v1382_v38 = vld [vmem:[%s1714_s5 + $0x58] sm:$0xff] }
  0x30   : > { %701 = vmatpush.bf16.msra.mxu3 %v1228_v14 }
  0x31   : > { %731 = vmatpush.bf16.msrb.mxu0 %v1160_v7 }
  0x32   : > { %760 = vmatpush.bf16.msrb.mxu1 %v1224_v17  ;;  %673 = vmatpush.bf16.msra.mxu2 %v1156_v21  ;;  %v1386_v17 = vld [vmem:[%s1714_s5 + $0x78] sm:$0xff]  ;;  %v1376_v21 = vld [vmem:[%s1714_s5 + $0x28] sm:$0xff] }
  0x34   : > { %702 = vmatpush.bf16.msra.mxu3 %v1220_v25 }
  0x35   : > { %732 = vmatpush.bf16.msrb.mxu0 %v1152_v26 }
  0x36   : > { %674 = vmatpush.bf16.msra.mxu2 %v1148_v30  ;;  %761 = vmatpush.bf16.msrb.mxu1 %v1216_v35  ;;  %v1383_v30 = vld [vmem:[%s1714_s5 + $0x60] sm:$0xff] }
  0x38   : > { %703 = vmatpush.bf16.msra.mxu3 %v1212_v34 }
  0x39   : > { %733 = vmatpush.bf16.msrb.mxu0 %v1144_v44 }
  0x3a   : > { %675 = vmatpush.bf16.msra.mxu2 %v1140_v39  ;;  %762 = vmatpush.bf16.msrb.mxu1 %v1208_v47 }
  0x3c   : > { %1131 = vmatmul.msk.bf16.gmra.mxu0 %vm375_vm0, %v1333_v50  ;;  %704 = vmatpush.bf16.msra.mxu3 %v1204_v43 }
  0x3d   : > { %1135 = vmatmul.msk.bf16.gmra.mxu1 %vm375_vm0, %v1333_v50 }
  0x3e   : > { %940 = vmatpush.bf16.msrb.mxu2 %v1378_v16 }
  0x40   : > { %969 = vmatpush.bf16.msrb.mxu3 %v1386_v17 }
  0x42   : > { %941 = vmatpush.bf16.msrb.mxu2 %v1377_v19 }
  0x44   : > { %970 = vmatpush.bf16.msrb.mxu3 %v1385_v20 }
  0x46   : > { %942 = vmatpush.bf16.msrb.mxu2 %v1376_v21 }
  0x48   : > { %971 = vmatpush.bf16.msrb.mxu3 %v1384_v22 }
  0x4a   : > { %943 = vmatpush.bf16.msrb.mxu2 %v1375_v29 }
  0x4c   : > { %1132 = vmatmul.msk.bf16.gmra.mxu0 %vm375_vm0, %v1334_v8  ;;  %972 = vmatpush.bf16.msrb.mxu3 %v1383_v30 }
  0x4d   : > { %1136 = vmatmul.msk.bf16.gmra.mxu1 %vm375_vm0, %v1334_v8 }
  0x4e   : > { %944 = vmatpush.bf16.msrb.mxu2 %v1374_v37 }
  0x50   : > { %973 = vmatpush.bf16.msrb.mxu3 %v1382_v38 }
  0x52   : > { %945 = vmatpush.bf16.msrb.mxu2 %v1373_v41 }
  0x99   : > { %v397_v49 = vpop.f32.mrf.mxu0 }
  0x9a   : > { %v426_v50 = vpop.f32.mrf.mxu1  ;;  %v398_v53 = vadd.f32 %v397_v49, %v1598_v51 }
  0x9b   : > { %v427_v54 = vadd.f32 %v426_v50, %v1600_v52 }
  0x9c   : > { %v446_v59 = vmax.f32 %v398_v53, 0.0 }
  0x9d   : > { %v447_v61 = vmax.f32 %v427_v54, 0.0 }
  0xa1   : > { %v399_v55 = vpop.f32.mrf.mxu0 }
  0xa2   : > { %v400_v56 = vadd.f32 %v399_v55, %v1598_v51  ;;  %v428_v57 = vpop.f32.mrf.mxu1 }
  0xa3   : > { %v429_v58 = vadd.f32 %v428_v57, %v1600_v52  ;;  %v1379_v57 = vld [vmem:[%s1714_s5 + $0x40] sm:$0xff] }
  0xa4   : > { %v448_v60 = vmax.f32 %v400_v56, 0.0  ;;  %v1381_v56 = vld [vmem:[%s1714_s5 + $0x50] sm:$0xff] }
  0xa5   : > { %v449_v62 = vmax.f32 %v429_v58, 0.0  ;;  %974 = vmatpush.bf16.msrb.mxu3 %v1381_v56  ;;  %v1371_v58 = vld [vmem:[%s1714_s5] sm:$0xff] }
  0xa6   : > { %v462_v63 = vpack.c.bf16 %v448_v60, %v446_v59  ;;  %v502_v59 = vld [vmem:[%s1713_s4] sm:$0x3] }
  0xa7   : > { %v463_v0 = vpack.c.bf16 %v449_v62, %v447_v61  ;;  %v1669_v61 = vperm.slane %v502_v59, 1 }
  0xa8   : > { %676 = vmatmul.bf16.vlgmr.msra.gmra.mxu2 %v462_v63  ;;  %734 = vmatmul.bf16.vlgmr.msrb.gmra.mxu0 %v462_v63 }
  0xa9   : > { %705 = vmatmul.bf16.vlgmr.msra.gmra.mxu3 %v463_v0  ;;  %763 = vmatmul.bf16.vlgmr.msrb.gmra.mxu1 %v463_v0  ;;  %v402_v1 = vpop.f32.mrf.mxu0 }
  0xaa   : > { %v431_v2 = vpop.f32.mrf.mxu1  ;;  %v403_v3 = vadd.f32 %v402_v1, %v1598_v51  ;;  %v1672_v1 = vperm.slane %v502_v59, 0 }
  0xab   : > { %v432_v4 = vadd.f32 %v431_v2, %v1600_v52 }
  0xac   : > { %v450_v9 = vmax.f32 %v403_v3, 0.0 }
  0xad   : > { %v451_v11 = vmax.f32 %v432_v4, 0.0 }
  0xb1   : > { %v404_v5 = vpop.f32.mrf.mxu0 }
  0xb2   : > { %v405_v6 = vadd.f32 %v404_v5, %v1598_v51  ;;  %v433_v7 = vpop.f32.mrf.mxu1 }
  0xb3   : > { %v434_v8 = vadd.f32 %v433_v7, %v1600_v52 }
  0xb4   : > { %v452_v10 = vmax.f32 %v405_v6, 0.0 }
  0xb5   : > { %v453_v12 = vmax.f32 %v434_v8, 0.0 }
  0xb6   : > { %v464_v13 = vpack.c.bf16 %v452_v10, %v450_v9 }
  0xb7   : > { %v465_v14 = vpack.c.bf16 %v453_v12, %v451_v11 }
  0xb8   : > { %681 = vmatmul.bf16.gmra.mxu2 %v464_v13  ;;  %739 = vmatmul.bf16.gmra.mxu0 %v464_v13 }
  0xb9   : > { %710 = vmatmul.bf16.gmra.mxu3 %v465_v14  ;;  %768 = vmatmul.bf16.gmra.mxu1 %v465_v14  ;;  %v407_v15 = vpop.f32.mrf.mxu0 }
  0xba   : > { %v436_v18 = vpop.f32.mrf.mxu1  ;;  %v408_v23 = vadd.f32 %v407_v15, %v1598_v51 }
  0xbb   : > { %v437_v24 = vadd.f32 %v436_v18, %v1600_v52 }
  0xbc   : > { %v454_v31 = vmax.f32 %v408_v23, 0.0 }
  0xbd   : > { %v455_v33 = vmax.f32 %v437_v24, 0.0 }
  0xc1   : > { %v409_v25 = vpop.f32.mrf.mxu0 }
  0xc2   : > { %v410_v26 = vadd.f32 %v409_v25, %v1598_v51  ;;  %v438_v27 = vpop.f32.mrf.mxu1 }
  0xc3   : > { %v439_v28 = vadd.f32 %v438_v27, %v1600_v52 }
  0xc4   : > { %v456_v32 = vmax.f32 %v410_v26, 0.0 }
  0xc5   : > { %v457_v34 = vmax.f32 %v439_v28, 0.0 }
  0xc6   : > { %v466_v35 = vpack.c.bf16 %v456_v32, %v454_v31 }
  0xc7   : > { %v467_v36 = vpack.c.bf16 %v457_v34, %v455_v33 }
  0xc8   : > { %686 = vmatmul.bf16.gmra.mxu2 %v466_v35  ;;  %744 = vmatmul.bf16.gmra.mxu0 %v466_v35 }
  0xc9   : > { %715 = vmatmul.bf16.gmra.mxu3 %v467_v36  ;;  %773 = vmatmul.bf16.gmra.mxu1 %v467_v36  ;;  %v412_v39 = vpop.f32.mrf.mxu0 }
  0xca   : > { %v441_v40 = vpop.f32.mrf.mxu1  ;;  %v413_v42 = vadd.f32 %v412_v39, %v1598_v51 }
  0xcb   : > { %v442_v43 = vadd.f32 %v441_v40, %v1600_v52 }
  0xcc   : > { %v458_v48 = vmax.f32 %v413_v42, 0.0 }
  0xcd   : > { %v459_v50 = vmax.f32 %v442_v43, 0.0 }
  0xd1   : > { %v414_v44 = vpop.f32.mrf.mxu0 }
  0xd2   : > { %v415_v45 = vadd.f32 %v414_v44, %v1598_v51  ;;  %v443_v46 = vpop.f32.mrf.mxu1  ;;  %v1380_v51 = vld [vmem:[%s1714_s5 + $0x48] sm:$0xff] }
  0xd3   : > { %v444_v47 = vadd.f32 %v443_v46, %v1600_v52  ;;  %v1372_v52 = vld [vmem:[%s1714_s5 + $0x8] sm:$0xff]  ;;  %975 = vmatpush.bf16.msrb.mxu3 %v1380_v51 }
  0xd4   : > { %v460_v49 = vmax.f32 %v415_v45, 0.0  ;;  %946 = vmatpush.bf16.msrb.mxu2 %v1372_v52 }
  0xd5   : > { %v461_v53 = vmax.f32 %v444_v47, 0.0 }
  0xd6   : > { %v468_v54 = vpack.c.bf16 %v460_v49, %v458_v48 }
  0xd7   : > { %v469_v55 = vpack.c.bf16 %v461_v53, %v459_v50  ;;  %976 = vmatpush.bf16.msrb.mxu3 %v1379_v57 }
  0xd8   : > { %691 = vmatmul.bf16.gmra.mxu2 %v468_v54  ;;  %749 = vmatmul.bf16.gmra.mxu0 %v468_v54 }
  0xd9   : > { %720 = vmatmul.bf16.gmra.mxu3 %v469_v55  ;;  %778 = vmatmul.bf16.gmra.mxu1 %v469_v55 }
  0xda   : > { %947 = vmatpush.bf16.msrb.mxu2 %v1371_v58 }
 0x125   : > { %v735_v60 = vpop.f32.mrf.mxu0 }
 0x126   : > { %v764_v62 = vpop.f32.mrf.mxu1  ;;  %v736_v63 = vadd.f32 %v735_v60, %v1669_v61 }
 0x128   : > { %v765_v4 = vadd.f32 %v764_v62, %v736_v63 }
 0x12a   : > { %v785_v9 = vmax.f32 %v765_v4, 0.0 }
 0x12b   : > { %v677_v0 = vpop.f32.mrf.mxu2 }
 0x12c   : > { %v706_v2 = vpop.f32.mrf.mxu3  ;;  %v678_v7 = vadd.f32 %v677_v0, %v1672_v1 }
 0x12d   : > { %v737_v3 = vpop.f32.mrf.mxu0 }
 0x12e   : > { %v738_v5 = vadd.f32 %v737_v3, %v1669_v61  ;;  %v766_v6 = vpop.f32.mrf.mxu1  ;;  %v707_v12 = vadd.f32 %v706_v2, %v678_v7 }
 0x130   : > { %v767_v8 = vadd.f32 %v766_v6, %v738_v5  ;;  %v784_v19 = vmax.f32 %v707_v12, 0.0 }
 0x132   : > { %v787_v10 = vmax.f32 %v767_v8, 0.0 }
 0x133   : > { %v679_v11 = vpop.f32.mrf.mxu2 }
 0x134   : > { %v801_v13 = vpack.c.bf16 %v787_v10, %v785_v9  ;;  %v680_v14 = vadd.f32 %v679_v11, %v1672_v1  ;;  %v708_v15 = vpop.f32.mrf.mxu3 }
 0x135   : > { %v740_v16 = vpop.f32.mrf.mxu0 }
 0x136   : > { %v709_v17 = vadd.f32 %v708_v15, %v680_v14  ;;  %v769_v18 = vpop.f32.mrf.mxu1  ;;  %977 = vmatmul.bf16.vlgmr.msrb.gmra.mxu3 %v801_v13  ;;  %v741_v22 = vadd.f32 %v740_v16, %v1669_v61 }
 0x138   : > { %v786_v20 = vmax.f32 %v709_v17, 0.0  ;;  %v770_v26 = vadd.f32 %v769_v18, %v741_v22 }
 0x13a   : > { %v800_v21 = vpack.c.bf16 %v786_v20, %v784_v19  ;;  %v789_v31 = vmax.f32 %v770_v26, 0.0 }
 0x13b   : > { %v682_v23 = vpop.f32.mrf.mxu2 }
 0x13c   : > { %v711_v24 = vpop.f32.mrf.mxu3  ;;  %948 = vmatmul.bf16.vlgmr.msrb.gmra.mxu2 %v800_v21  ;;  %v683_v29 = vadd.f32 %v682_v23, %v1672_v1 }
 0x13d   : > { %v742_v25 = vpop.f32.mrf.mxu0 }
 0x13e   : > { %v743_v27 = vadd.f32 %v742_v25, %v1669_v61  ;;  %v771_v28 = vpop.f32.mrf.mxu1  ;;  %v712_v34 = vadd.f32 %v711_v24, %v683_v29  ;;  %v1418_v24 = vld [vmem:[%s1715_s6] ss:$0 sm:$0xff] }
 0x140   : > { %v772_v30 = vadd.f32 %v771_v28, %v743_v27  ;;  %v788_v41 = vmax.f32 %v712_v34, 0.0 }
 0x142   : > { %v791_v32 = vmax.f32 %v772_v30, 0.0 }
 0x143   : > { %v684_v33 = vpop.f32.mrf.mxu2 }
 0x144   : > { %v685_v35 = vadd.f32 %v684_v33, %v1672_v1  ;;  %v713_v36 = vpop.f32.mrf.mxu3  ;;  %v803_v37 = vpack.c.bf16 %v791_v32, %v789_v31 }
 0x145   : > { %v745_v38 = vpop.f32.mrf.mxu0 }
 0x146   : > { %v714_v39 = vadd.f32 %v713_v36, %v685_v35  ;;  %v774_v40 = vpop.f32.mrf.mxu1  ;;  %982 = vmatmul.bf16.gmra.mxu3 %v803_v37  ;;  %v746_v43 = vadd.f32 %v745_v38, %v1669_v61 }
 0x148   : > { %v790_v42 = vmax.f32 %v714_v39, 0.0  ;;  %v775_v48 = vadd.f32 %v774_v40, %v746_v43 }
 0x14a   : > { %v802_v44 = vpack.c.bf16 %v790_v42, %v788_v41  ;;  %v793_v55 = vmax.f32 %v775_v48, 0.0 }
 0x14b   : > { %v687_v45 = vpop.f32.mrf.mxu2 }
 0x14c   : > { %v716_v46 = vpop.f32.mrf.mxu3  ;;  %953 = vmatmul.bf16.gmra.mxu2 %v802_v44  ;;  %v688_v53 = vadd.f32 %v687_v45, %v1672_v1 }
 0x14d   : > { %v747_v47 = vpop.f32.mrf.mxu0 }
 0x14e   : > { %v748_v49 = vadd.f32 %v747_v47, %v1669_v61  ;;  %v776_v50 = vpop.f32.mrf.mxu1  ;;  %v717_v52 = vadd.f32 %v716_v46, %v688_v53 }
 0x150   : > { %v777_v54 = vadd.f32 %v776_v50, %v748_v49  ;;  %v792_v0 = vmax.f32 %v717_v52, 0.0 }
 0x152   : > { %v795_v56 = vmax.f32 %v777_v54, 0.0 }
 0x153   : > { %v689_v51 = vpop.f32.mrf.mxu2 }
 0x154   : > { %v690_v57 = vadd.f32 %v689_v51, %v1672_v1  ;;  %v718_v58 = vpop.f32.mrf.mxu3  ;;  %v805_v59 = vpack.c.bf16 %v795_v56, %v793_v55 }
 0x155   : > { %v750_v60 = vpop.f32.mrf.mxu0 }
 0x156   : > { %v719_v62 = vadd.f32 %v718_v58, %v690_v57  ;;  %v779_v63 = vpop.f32.mrf.mxu1  ;;  %987 = vmatmul.bf16.gmra.mxu3 %v805_v59  ;;  %v751_v3 = vadd.f32 %v750_v60, %v1669_v61 }
 0x158   : > { %v794_v2 = vmax.f32 %v719_v62, 0.0  ;;  %v780_v8 = vadd.f32 %v779_v63, %v751_v3 }
 0x15a   : > { %v804_v4 = vpack.c.bf16 %v794_v2, %v792_v0  ;;  %v797_v13 = vmax.f32 %v780_v8, 0.0 }
 0x15b   : > { %v692_v5 = vpop.f32.mrf.mxu2 }
 0x15c   : > { %v721_v6 = vpop.f32.mrf.mxu3  ;;  %958 = vmatmul.bf16.gmra.mxu2 %v804_v4  ;;  %v693_v11 = vadd.f32 %v692_v5, %v1672_v1 }
 0x15d   : > { %v752_v7 = vpop.f32.mrf.mxu0 }
 0x15e   : > { %v753_v9 = vadd.f32 %v752_v7, %v1669_v61  ;;  %v781_v10 = vpop.f32.mrf.mxu1  ;;  %v722_v16 = vadd.f32 %v721_v6, %v693_v11 }
 0x160   : > { %v782_v12 = vadd.f32 %v781_v10, %v753_v9  ;;  %v796_v21 = vmax.f32 %v722_v16, 0.0 }
 0x162   : > { %v799_v14 = vmax.f32 %v782_v12, 0.0 }
 0x163   : > { %v694_v15 = vpop.f32.mrf.mxu2 }
 0x164   : > { %v695_v17 = vadd.f32 %v694_v15, %v1672_v1  ;;  %v807_v18 = vpack.c.bf16 %v799_v14, %v797_v13  ;;  %v723_v19 = vpop.f32.mrf.mxu3 }
 0x166   : > { %v724_v20 = vadd.f32 %v723_v19, %v695_v17  ;;  %992 = vmatmul.bf16.gmra.mxu3 %v807_v18 }
 0x168   : > { %v798_v22 = vmax.f32 %v724_v20, 0.0 }
 0x16a   : > { %v806_v23 = vpack.c.bf16 %v798_v22, %v796_v21 }
 0x16c   : > { %963 = vmatmul.bf16.gmra.mxu2 %v806_v23 }
 0x1b9   : > { %v978_v61 = vpop.f32.mrf.mxu3 }
 0x1bf   : > { %v949_v25 = vpop.f32.mrf.mxu2 }
 0x1c0   : > { %v950_v26 = vadd.f32 %v1418_v24, %v949_v25 }
 0x1c1   : > { %v980_v1 = vpop.f32.mrf.mxu3 }
 0x1c2   : > { %v979_v27 = vadd.f32 %v978_v61, %v950_v26 }
 0x1c4   : > { %998 = vst [vmem:[%s1696_s21] sm:$0xff] %v979_v27 }
 0x1c7   : > { %v951_v28 = vpop.f32.mrf.mxu2 }
 0x1c8   : > { %v952_v29 = vadd.f32 %v1418_v24, %v951_v28 }
 0x1c9   : > { %v983_v30 = vpop.f32.mrf.mxu3 }
 0x1ca   : > { %v981_v31 = vadd.f32 %v980_v1, %v952_v29 }
 0x1cc   : > { %999 = vst [vmem:[%s1696_s21 + $0x8] sm:$0xff] %v981_v31 }
 0x1cf   : > { %v954_v32 = vpop.f32.mrf.mxu2 }
 0x1d0   : > { %v955_v33 = vadd.f32 %v1418_v24, %v954_v32 }
 0x1d1   : > { %v985_v34 = vpop.f32.mrf.mxu3 }
 0x1d2   : > { %v984_v35 = vadd.f32 %v983_v30, %v955_v33 }
 0x1d4   : > { %1000 = vst [vmem:[%s1696_s21 + $0x10] sm:$0xff] %v984_v35 }
 0x1d7   : > { %v956_v36 = vpop.f32.mrf.mxu2 }
 0x1d8   : > { %v957_v37 = vadd.f32 %v1418_v24, %v956_v36 }
 0x1d9   : > { %v988_v39 = vpop.f32.mrf.mxu3 }
 0x1da   : > { %v986_v38 = vadd.f32 %v985_v34, %v957_v37 }
 0x1dc   : > { %1001 = vst [vmem:[%s1696_s21 + $0x18] sm:$0xff] %v986_v38 }
 0x1df   : > { %v959_v40 = vpop.f32.mrf.mxu2 }
 0x1e0   : > { %v960_v41 = vadd.f32 %v1418_v24, %v959_v40 }
 0x1e1   : > { %v990_v43 = vpop.f32.mrf.mxu3 }
 0x1e2   : > { %v989_v42 = vadd.f32 %v988_v39, %v960_v41 }
 0x1e4   : > { %1002 = vst [vmem:[%s1696_s21 + $0x20] sm:$0xff] %v989_v42 }
 0x1e7   : > { %v961_v44 = vpop.f32.mrf.mxu2 }
 0x1e8   : > { %v962_v45 = vadd.f32 %v1418_v24, %v961_v44 }
 0x1e9   : > { %v993_v47 = vpop.f32.mrf.mxu3 }
 0x1ea   : > { %v991_v46 = vadd.f32 %v990_v43, %v962_v45 }
 0x1ec   : > { %1003 = vst [vmem:[%s1696_s21 + $0x28] sm:$0xff] %v991_v46 }
 0x1ef   : > { %v964_v48 = vpop.f32.mrf.mxu2 }
 0x1f0   : > { %v965_v49 = vadd.f32 %v1418_v24, %v964_v48 }
 0x1f1   : > { %v995_v55 = vpop.f32.mrf.mxu3 }
 0x1f2   : > { %v994_v50 = vadd.f32 %v993_v47, %v965_v49 }
 0x1f4   : > { %1004 = vst [vmem:[%s1696_s21 + $0x30] sm:$0xff] %v994_v50 }
 0x1f7   : > { %v966_v53 = vpop.f32.mrf.mxu2 }
 0x1f8   : > { %v967_v54 = vadd.f32 %v1418_v24, %v966_v53 }
 0x1fa   : > { %v996_v56 = vadd.f32 %v995_v55, %v967_v54 }
 0x1fc   : > { %1005 = vst [vmem:[%s1696_s21 + $0x38] sm:$0xff] %v996_v56 }
 0x1fd PF: > { %s19_s24 = sadd.s32 1, %s1493_s24  }
 0x1fe   : > { %p16_p7 = scmp.ge.s32.totalorder %s19_s24, 4  }
 0x200   :  { %18 = sbr.rel (!%p16_p7) target bundleno = 2 (0x2), region = 87 }
 0x205   :  { %1028 = vsyncpa [#allocation3], 1 }
 0x206   :  { %1030 = vsyncpa [#allocation3 + $0x1], 1 }
 0x207   :  { %1031 = vsyncpa [#allocation5], 1 }

</bundles_post_ra>
